<compile_context>
chip_gen: v6e
topology: v6e:2x2x1
jax: 0.10.0
libtpu: 0.0.40
codegen_flags: <defaults>
</compile_context>

<pallas_src>
import math
import numpy as np
import jax
import jax.numpy as jnp
from jax import lax
from jax.experimental import pallas as pl
from jax.experimental.pallas import tpu as pltpu

_INV_SQRT2 = 1.0 / math.sqrt(2.0)
_SQRT_2_OVER_PI = math.sqrt(2.0 / math.pi)


def _round_up(x, m):
    return ((x + m - 1) // m) * m


# --------------------------------------------------------------------------- #
# Kernel: per-expert MLP on its dispatched token slab, H-chunked reduction.   #
# --------------------------------------------------------------------------- #
def _make_expert_kernel(gelu_approx):
    use_tanh = (gelu_approx == "tanh")

    def kernel(x_ref, w1_ref, b1_ref, w2_ref, out_ref):
        h = pl.program_id(2)                                    # hidden-chunk axis

        x = x_ref[0]                                            # (TS, d)  bf16
        pre = jnp.dot(x, w1_ref[0, 0],
                      preferred_element_type=jnp.float32) + b1_ref[0]   # (TS, TH) f32
        if use_tanh:
            # tanh-approx GELU: transcendental lands on the EUP slot (v5e relief)
            act = 0.5 * pre * (1.0 + jnp.tanh(
                _SQRT_2_OVER_PI * (pre + 0.044715 * pre * pre * pre)))
        else:
            # exact erf GELU, matching torch.nn.GELU(approximate='none')
            act = 0.5 * pre * (1.0 + lax.erf(pre * _INV_SQRT2))
        y = jnp.dot(act.astype(w2_ref.dtype), w2_ref[0],
                    preferred_element_type=jnp.float32)         # (TS, d) f32

        # f32 output block is resident across h; accumulate directly (no scratch).
        @pl.when(h == 0)
        def _():
            out_ref[0] = y

        @pl.when(h != 0)
        def _():
            out_ref[0] += y

    return kernel


# --------------------------------------------------------------------------- #
# Routing: eval-mode NoisyTopkRouter + exact per-expert capacity keep.        #
# --------------------------------------------------------------------------- #
def _route(flat, gate_w, *, top_k, cap_factor, n_exp):
    """Returns (token_idx (E, C) int32, gate_weight (E, C) f32, capacity C).

    Exactly min(capacity, n_assigned) tokens kept per expert (top-capacity by
    gate score), matching the PyTorch torch.topk drop policy; dropped / empty
    slots get gate weight 0 and contribute nothing.
    """
    N = flat.shape[0]
    logits = flat.astype(jnp.float32) @ gate_w.T.astype(jnp.float32)    # (N, E)
    gates = jax.nn.softmax(logits, axis=-1)                             # (N, E)
    _, top_inds = lax.top_k(gates, top_k)                               # (N, K)
    assign = jax.nn.one_hot(top_inds, n_exp, dtype=jnp.float32).sum(axis=1) > 0
    score = jnp.where(assign, gates, -1.0)                              # gates >= 0 > -1

    capacity = min(math.ceil(cap_factor * N / n_exp), N)
    top_scores, top_tok = lax.top_k(score.T, capacity)                  # (E, C)
    valid = top_scores > -0.5
    gate_weight = jnp.where(valid, top_scores, 0.0).astype(jnp.float32)
    return top_tok.astype(jnp.int32), gate_weight, capacity


def _vmem_limit_bytes(ts, th, d):
    declared = 2 * (ts * d * 2          # x tile (bf16, double-buffered)
                    + d * th * 2        # W1 chunk
                    + max(th, 128) * 4  # b1 chunk
                    + th * d * 2        # W2 chunk
                    + ts * d * 4)       # f32 output block
    temps = 3 * ts * th * 4             # pre / act / matmul temporaries (f32)
    return int(min(max(int((declared + temps) * 1.5), 32 * 1024 * 1024),
                   100 * 1024 * 1024))


# --------------------------------------------------------------------------- #
# Forward                                                                     #
# --------------------------------------------------------------------------- #
def sparse_moe_forward(hidden_states, params, *, top_k, cap_factor,
                       ts=256, th=512, compute_dtype=jnp.bfloat16,
                       gelu_approx="none"):
    """SparseMoE eval forward.  ts/th defaults are sized for v7x (64 MiB VMEM);
    on v5e/v6e (128 MiB VMEM) use ts/th ~ 1024 to clear the weight-stream
    roofline."""
    B, T, d = hidden_states.shape
    N = B * T
    flat = hidden_states.reshape(N, d)

    gate_w = params["gate_w"]                                   # (E, d)
    W1, b1, W2, b2 = params["w1"], params["b1"], params["w2"], params["b2"]
    E, _, H = W1.shape

    tok_idx, gw_ec, C = _route(flat, gate_w, top_k=top_k,
                               cap_factor=cap_factor, n_exp=E)

    # ---- tiling parameters -------------------------------------------------
    TS = min(_round_up(ts, 8), _round_up(C, 8))         # slot tile (sublane axis)
    C_pad = _round_up(C, TS)
    TH = min(_round_up(th, 128), _round_up(H, 128))     # hidden chunk (lane axis)
    H_pad = _round_up(H, TH)                            # TH always divides H_pad
    nH = H_pad // TH

    pad_c = C_pad - C
    tok_idx_p = jnp.pad(tok_idx, ((0, 0), (0, pad_c)))          # (E, C_pad) idx 0 pad
    gw_p = jnp.pad(gw_ec, ((0, 0), (0, pad_c)))                 # (E, C_pad) 0 pad

    # ---- sparse dispatch: gather each expert's tokens ----------------------
    x_disp = jnp.take(flat.astype(compute_dtype), tok_idx_p, axis=0)   # (E, C_pad, d)

    # ---- weights: pad H, block W1 so each chunk is one contiguous DMA ------
    # TODO(synk): pre-block / pre-cast weights once at load time in a real
    # deployment instead of per-call; optional fp8 weight quant for v7x MXU.
    W1p = jnp.pad(W1, ((0, 0), (0, 0), (0, H_pad - H))).astype(compute_dtype)
    W1b = W1p.reshape(E, d, nH, TH).transpose(0, 2, 1, 3)       # (E, nH, d, TH)
    W2p = jnp.pad(W2, ((0, 0), (0, H_pad - H), (0, 0))).astype(compute_dtype)
    b1p = jnp.pad(b1, ((0, 0), (0, 0), (0, H_pad - H))).astype(jnp.float32)
    b2f = b2.astype(jnp.float32)                                # (E, 1, d)

    grid = (E, C_pad // TS, nH)
    kernel = _make_expert_kernel(gelu_approx)

    y = pl.pallas_call(
        kernel,
        out_shape=jax.ShapeDtypeStruct((E, C_pad, d), jnp.float32),
        grid_spec=pltpu.PrefetchScalarGridSpec(
            num_scalar_prefetch=0,
            grid=grid,
            in_specs=[
                pl.BlockSpec((1, TS, d), lambda e, s, h: (e, s, 0)),       # tokens
                pl.BlockSpec((1, 1, d, TH), lambda e, s, h: (e, h, 0, 0)),  # W1 chunk
                pl.BlockSpec((1, 1, TH), lambda e, s, h: (e, 0, h)),        # b1 chunk
                pl.BlockSpec((1, TH, d), lambda e, s, h: (e, h, 0)),        # W2 chunk
            ],
            out_specs=pl.BlockSpec((1, TS, d), lambda e, s, h: (e, s, 0)),  # f32 acc
        ),
        compiler_params=pltpu.CompilerParams(
            dimension_semantics=("parallel", "parallel", "arbitrary"),
            vmem_limit_bytes=_vmem_limit_bytes(TS, TH, d),
        ),
    )(x_disp, W1b, b1p, W2p)

    # ---- combine: add b2, weight by gate score, scatter-add back to tokens -
    contrib = (y + b2f) * gw_p[:, :, None]                      # (E, C_pad, d) f32
    final = jnp.zeros((N, d), jnp.float32).at[tok_idx_p.reshape(-1)].add(
        contrib.reshape(-1, d))

    # eval mode: dropout is identity and aux loss is 0.0 (self.training == False)
    aux = jnp.asarray(0.0, dtype=jnp.float32)
    # TODO(synk): training-mode noisy routing, dropout, aux loss and multi-device
    # all_to_all expert parallelism are not reproduced (eval, world_size == 1).
    return final.astype(hidden_states.dtype).reshape(B, T, d), aux


# --------------------------------------------------------------------------- #
# Pure-JAX reference (same routing + same bf16/f32 compute recipe)            #
# --------------------------------------------------------------------------- #
def sparse_moe_reference(hidden_states, params, *, top_k, cap_factor,
                         compute_dtype=jnp.bfloat16):
    B, T, d = hidden_states.shape
    N = B * T
    flat = hidden_states.reshape(N, d)
    E = params["gate_w"].shape[0]
    tok_idx, gw_ec, _ = _route(flat, params["gate_w"], top_k=top_k,
                               cap_factor=cap_factor, n_exp=E)
    xg = jnp.take(flat.astype(compute_dtype), tok_idx, axis=0)        # (E, C, d)
    final = jnp.zeros((N, d), jnp.float32)
    for e in range(E):
        pre = jnp.dot(xg[e], params["w1"][e].astype(compute_dtype),
                      preferred_element_type=jnp.float32) + params["b1"][e]
        act = 0.5 * pre * (1.0 + lax.erf(pre * _INV_SQRT2))
        y = jnp.dot(act.astype(compute_dtype),
                    params["w2"][e].astype(compute_dtype),
                    preferred_element_type=jnp.float32) + params["b2"][e]
        final = final.at[tok_idx[e]].add(gw_ec[e][:, None] * y)
    return final.astype(flat.dtype).reshape(B, T, d), jnp.asarray(0.0, jnp.float32)


def init_params(key, d, n_exp):
    H = 4 * d
    k0, k1, k2, k3, k4 = jax.random.split(key, 5)
    return {
        "gate_w": jax.random.normal(k0, (n_exp, d), jnp.float32) / math.sqrt(d),
        "w1": jax.random.normal(k1, (n_exp, d, H), jnp.float32) / math.sqrt(d),
        "b1": jax.random.normal(k2, (n_exp, 1, H), jnp.float32) * 0.02,
        "w2": jax.random.normal(k3, (n_exp, H, d), jnp.float32) / math.sqrt(H),
        "b2": jax.random.normal(k4, (n_exp, 1, d), jnp.float32) * 0.02,
    }


if __name__ == "__main__":
    B, T, d = 2, 8, 32          # N = 16 tokens, hidden = 4*d = 128
    n_exp, top_k, cap_factor = 4, 2, 2.0

    key = jax.random.PRNGKey(0)
    kx, kp = jax.random.split(key)
    x = jax.random.normal(kx, (B, T, d), jnp.float32)
    params = init_params(kp, d, n_exp)

    out, aux = sparse_moe_forward(x, params, top_k=top_k, cap_factor=cap_factor)
    out = jax.block_until_ready(out)

    ref, _ = sparse_moe_reference(x, params, top_k=top_k, cap_factor=cap_factor)
    np.testing.assert_allclose(np.asarray(out), np.asarray(ref), rtol=2e-2, atol=2e-2)
    assert out.shape == (B, T, d) and float(aux) == 0.0
    print("KERNEL_OK")
</pallas_src>

<mosaic_0001>
module attributes {stable_mosaic.version = 11 : i64} {
  func.func @kernel(%arg0: i32, %arg1: i32, %arg2: i32, %arg3: memref<1x8x32xbf16, #tpu.memory_space<vmem>>, %arg4: memref<1x1x32x128xbf16, #tpu.memory_space<vmem>>, %arg5: memref<1x1x128xf32, #tpu.memory_space<vmem>>, %arg6: memref<1x128x32xbf16, #tpu.memory_space<vmem>>, %arg7: memref<1x8x32xf32, #tpu.memory_space<vmem>>) attributes {dimension_semantics = [#tpu.dimension_semantics<parallel>, #tpu.dimension_semantics<parallel>, #tpu.dimension_semantics<arbitrary>], iteration_bounds = array<i64: 4, 1, 1>, scalar_prefetch = 0 : i64, scratch_operands = 0 : i64, tpu.core_type = #tpu.core_type<tc>, window_params = [{transform_indices = @transform_0, window_bounds = array<i64: 1, 8, 32>}, {transform_indices = @transform_1, window_bounds = array<i64: 1, 1, 32, 128>}, {transform_indices = @transform_2, window_bounds = array<i64: 1, 1, 128>}, {transform_indices = @transform_3, window_bounds = array<i64: 1, 128, 32>}, {transform_indices = @transform_4, window_bounds = array<i64: 1, 8, 32>}]} {
    %c0 = arith.constant 0 : index
    %c0_0 = arith.constant 0 : index
    %c0_1 = arith.constant 0 : index
    %0 = vector.load %arg3[%c0, %c0_0, %c0_1] : memref<1x8x32xbf16, #tpu.memory_space<vmem>>, vector<1x8x32xbf16>
    %1 = vector.shape_cast %0 : vector<1x8x32xbf16> to vector<8x32xbf16>
    %c0_2 = arith.constant 0 : index
    %c0_3 = arith.constant 0 : index
    %c0_4 = arith.constant 0 : index
    %c0_5 = arith.constant 0 : index
    %2 = vector.load %arg4[%c0_2, %c0_3, %c0_4, %c0_5] : memref<1x1x32x128xbf16, #tpu.memory_space<vmem>>, vector<1x1x32x128xbf16>
    %3 = vector.shape_cast %2 : vector<1x1x32x128xbf16> to vector<32x128xbf16>
    %cst = arith.constant dense<0.000000e+00> : vector<8x128xf32>
    %4 = tpu.matmul %1, %3, %cst {dimension_numbers = #tpu.dot_dimension_numbers<[1], [0], [0], [1], [0, 0, 1, 1], [], []>} : vector<8x32xbf16>, vector<32x128xbf16>, vector<8x128xf32> -> vector<8x128xf32>
    %c0_6 = arith.constant 0 : index
    %c0_7 = arith.constant 0 : index
    %c0_8 = arith.constant 0 : index
    %5 = vector.load %arg5[%c0_6, %c0_7, %c0_8] : memref<1x1x128xf32, #tpu.memory_space<vmem>>, vector<1x1x128xf32>
    %6 = vector.shape_cast %5 : vector<1x1x128xf32> to vector<1x128xf32>
    %7 = vector.broadcast %6 : vector<1x128xf32> to vector<8x128xf32>
    %8 = arith.addf %4, %7 : vector<8x128xf32>
    %cst_9 = arith.constant 5.000000e-01 : f32
    %9 = vector.broadcast %cst_9 : f32 to vector<8x128xf32>
    %10 = arith.mulf %9, %8 : vector<8x128xf32>
    %cst_10 = arith.constant 0.707106769 : f32
    %11 = vector.broadcast %cst_10 : f32 to vector<8x128xf32>
    %12 = arith.mulf %8, %11 : vector<8x128xf32>
    %13 = math.erf %12 : vector<8x128xf32>
    %cst_11 = arith.constant 1.000000e+00 : f32
    %14 = vector.broadcast %cst_11 : f32 to vector<8x128xf32>
    %15 = arith.addf %14, %13 : vector<8x128xf32>
    %16 = arith.mulf %10, %15 : vector<8x128xf32>
    %17 = arith.truncf %16 : vector<8x128xf32> to vector<8x128xbf16>
    %c0_12 = arith.constant 0 : index
    %c0_13 = arith.constant 0 : index
    %c0_14 = arith.constant 0 : index
    %18 = vector.load %arg6[%c0_12, %c0_13, %c0_14] : memref<1x128x32xbf16, #tpu.memory_space<vmem>>, vector<1x128x32xbf16>
    %19 = vector.shape_cast %18 : vector<1x128x32xbf16> to vector<128x32xbf16>
    %cst_15 = arith.constant dense<0.000000e+00> : vector<8x32xf32>
    %20 = tpu.matmul %17, %19, %cst_15 {dimension_numbers = #tpu.dot_dimension_numbers<[1], [0], [0], [1], [0, 0, 1, 1], [], []>} : vector<8x128xbf16>, vector<128x32xbf16>, vector<8x32xf32> -> vector<8x32xf32>
    %c0_i32 = arith.constant 0 : i32
    %21 = arith.cmpi eq, %arg2, %c0_i32 : i32
    %22 = arith.extui %21 : i1 to i32
    %c0_i32_16 = arith.constant 0 : i32
    %23 = arith.cmpi ne, %22, %c0_i32_16 : i32
    scf.if %23 {
      %c0_19 = arith.constant 0 : index
      %c0_20 = arith.constant 0 : index
      %c0_21 = arith.constant 0 : index
      %27 = vector.load %arg7[%c0_19, %c0_20, %c0_21] : memref<1x8x32xf32, #tpu.memory_space<vmem>>, vector<1x8x32xf32>
      %28 = vector.shape_cast %27 : vector<1x8x32xf32> to vector<8x32xf32>
      %29 = vector.shape_cast %20 : vector<8x32xf32> to vector<1x8x32xf32>
      tpu.vector_store %arg7[%c0_19, %c0_20, %c0_21], %29 {strides = array<i32>} : memref<1x8x32xf32, #tpu.memory_space<vmem>>, vector<1x8x32xf32>,
    } else {
    }
    %c0_i32_17 = arith.constant 0 : i32
    %24 = arith.cmpi ne, %arg2, %c0_i32_17 : i32
    %25 = arith.extui %24 : i1 to i32
    %c0_i32_18 = arith.constant 0 : i32
    %26 = arith.cmpi ne, %25, %c0_i32_18 : i32
    scf.if %26 {
      %c0_19 = arith.constant 0 : index
      %c0_20 = arith.constant 0 : index
      %c0_21 = arith.constant 0 : index
      %27 = vector.load %arg7[%c0_19, %c0_20, %c0_21] : memref<1x8x32xf32, #tpu.memory_space<vmem>>, vector<1x8x32xf32>
      %28 = vector.shape_cast %27 : vector<1x8x32xf32> to vector<8x32xf32>
      %29 = arith.addf %28, %20 : vector<8x32xf32>
      %c0_22 = arith.constant 0 : index
      %c0_23 = arith.constant 0 : index
      %c0_24 = arith.constant 0 : index
      %30 = vector.load %arg7[%c0_22, %c0_23, %c0_24] : memref<1x8x32xf32, #tpu.memory_space<vmem>>, vector<1x8x32xf32>
      %31 = vector.shape_cast %30 : vector<1x8x32xf32> to vector<8x32xf32>
      %32 = vector.shape_cast %29 : vector<8x32xf32> to vector<1x8x32xf32>
      tpu.vector_store %arg7[%c0_22, %c0_23, %c0_24], %32 {strides = array<i32>} : memref<1x8x32xf32, #tpu.memory_space<vmem>>, vector<1x8x32xf32>,
    } else {
    }
    return
  }
  func.func @transform_0(%arg0: i32, %arg1: i32, %arg2: i32) -> (i32, i32, i32) {
    %c0_i32 = arith.constant 0 : i32
    %c0_i32_0 = arith.constant 0 : i32
    return %arg0, %arg1, %c0_i32 : i32, i32, i32
  }
  func.func @transform_1(%arg0: i32, %arg1: i32, %arg2: i32) -> (i32, i32, i32, i32) {
    %c0_i32 = arith.constant 0 : i32
    %c0_i32_0 = arith.constant 0 : i32
    %c0_i32_1 = arith.constant 0 : i32
    return %arg0, %arg2, %c0_i32, %c0_i32_0 : i32, i32, i32, i32
  }
  func.func @transform_2(%arg0: i32, %arg1: i32, %arg2: i32) -> (i32, i32, i32) {
    %c0_i32 = arith.constant 0 : i32
    %c0_i32_0 = arith.constant 0 : i32
    return %arg0, %c0_i32, %arg2 : i32, i32, i32
  }
  func.func @transform_3(%arg0: i32, %arg1: i32, %arg2: i32) -> (i32, i32, i32) {
    %c0_i32 = arith.constant 0 : i32
    %c0_i32_0 = arith.constant 0 : i32
    return %arg0, %arg2, %c0_i32 : i32, i32, i32
  }
  func.func @transform_4(%arg0: i32, %arg1: i32, %arg2: i32) -> (i32, i32, i32) {
    %c0_i32 = arith.constant 0 : i32
    %c0_i32_0 = arith.constant 0 : i32
    return %arg0, %arg1, %c0_i32 : i32, i32, i32
  }
}

</mosaic_0001>

<bundles_post_ra>
// kernel: tpu_custom_call.1
= control target key start
LH: loop header
LB: loop body
LE: loop exit
PB: predicated region body
PF: predicated region fallthrough
CT: control target
= control target key end

     0   :  { %9 = vsyncpa [#allocation3], 0  ;;  %s1033_s0 = inlined_call_operand.vmem [shape: bf16[4,8,32], index: 0, kind: input, shape index: {}]   ;;  %s1034_s1 = inlined_call_operand.vmem [shape: bf16[4,1,32,128], index: 1, kind: input, shape index: {}]   ;;  %s1035_s2 = inlined_call_operand.vmem [shape: f32[4,1,128], index: 2, kind: input, shape index: {}]   ;;  %s1036_s3 = inlined_call_operand.vmem [shape: bf16[4,128,32], index: 3, kind: input, shape index: {}]   ;;  %s1037_s4 = inlined_call_operand.hbm [shape: f32[4,8,32], index: 4, kind: output, shape index: {}]  }
   0x1   :  { %11 = vsyncpa [#allocation3 + $0x1], 0  ;;  %s895_s15 = smov 0   ;;  %s897_s16 = smov 0  }
   0x2   :  { %s899_s17 = smov 0   ;;  %s901_s18 = smov 0  }
   0x3   :  { %s903_s19 = smov 0   ;;  %s905_s20 = smov 0  }
   0x4 LB: > { %s651_s21 = sadd.s32 4294967295, %s865_s20   ;;  %s652_s22 = sadd.s32 4294967294, %s865_s20   ;;  %s865_s20 = sphi %s905_s20, %s17_s20   ;;  %s861_s19 = sphi %s903_s19, %s1044_s19   ;;  %s857_s18 = sphi %s901_s18, %s1043_s18   ;;  %s853_s17 = sphi %s899_s17, %s1042_s17   ;;  %s849_s16 = sphi %s897_s16, %s1041_s16   ;;  %s845_s15 = sphi %s895_s15, %s1040_s15  }
   0x5   : > { %s36_s23 = sadd.s32 1, %s861_s19  ;;  %s157_s24 = sadd.s32 1, %s853_s17 }
   0x6   : > { %p38_p0 = scmp.ge.s32.totalorder %s36_s23, 4  ;;  %p167_p1 = scmp.ne.s32.totalorder %s853_s17, %s849_s16 }
   0x7   : > { %p168_p2 = scmp.eq.s32.totalorder %s651_s21, 3  ;;  %p173_p3 = scmp.ne.s32.totalorder %s849_s16, %s845_s15 }
   0x8   : > { %s1046_s23 = smov (%p38_p0, %s36_s23), 0  ;;  %p174_p5 = scmp.eq.s32.totalorder %s652_s22, 3 }
   0x9   : > { %p935_p4 = por %p168_p2, %p167_p1  ;;  %s152_s26 = ssub.s32 %s861_s19, %s1046_s23 }
   0xa   : > { %p655_p6 = scmp.ge.s32.totalorder %s865_s20, 1  ;;  %p155_p7 = scmp.eq.s32.totalorder %s152_s26, 0 }
   0xb   : > { %p942_p8 = por %p174_p5, %p173_p3  ;;  %p236_p9 = scmp.lt.s32.totalorder %s865_s20, 5 }
   0xc   : > { %s948_s28 = scalar_select %p155_p7, %s853_s17, %s157_s24  }
   0xd   : > { %p237_p10 = pnand %p655_p6, %p236_p9 }
   0xe   : > { %p288_p11 = scmp.lt.s32.totalorder (!%p237_p10), %s857_s18, 3  ;;  %s675_s6 = sshll.u32 (!%p237_p10), %s857_s18, 7 }
   0xf   : > { %240 = sbr.rel (%p237_p10) target bundleno = 458 (0x1ca), region = 36  ;;  %s986_s10 = scalar_lea.hbm (!%p237_p10), %s1037_s4, %s675_s6 }
  0x14   : > { %v867_v0 = vmov 0.0   ;;  %vm868_vm0 = vmmov 0   ;;  %s952_s29 = scalar_select %p288_p11, %s857_s18, 3  ;;  %vm345_vm1 = vcmask 261120  }
  0x15   : > { %692 = vmatprep.subr.bf16.mxu0 %v867_v0  ;;  %696 = vmatprep.mubr.msk.bf16.mxu0 %vm868_vm0, %v867_v0  ;;  %s869_s18 = smov [#allocation2]  }
  0x16   : > { %700 = vmatprep.subr.bf16.mxu1 %v867_v0  ;;  %716 = vmatprep.mubr.msk.bf16.mxu1 %vm868_vm0, %v867_v0  ;;  %s678_s30 = sshll.u32 %s952_s29, 4  ;;  %s679_s5 = sshll.u32 %s952_s29, 6 }
  0x17   : > { %s303_s8 = scalar_lea.vmem %s1034_s1, %s678_s30  ;;  %s962_s11 = scalar_lea.vmem %s1036_s3, %s679_s5 }
  0x18   : > { %v777_v1 = vld [vmem:[%s303_s8 + $0x8] sm:$0xff]   ;;  %s657_s12 = sshll.u32 %s952_s29, 2  ;;  %v778_v2 = vld [vmem:[%s303_s8] sm:$0xff]   ;;  %v779_v3 = vld [vmem:[%s962_s11 + $0x38] sm:$0xff]   ;;  %s309_s26 = scalar_lea.vmem %s1035_s2, %s952_s29 }
  0x19   : > { %s294_s21 = scalar_lea.vmem %s1033_s0, %s657_s12  ;;  %693 = vmatpush3.bf16.msra.mxu0 %v777_v1  ;;  %v780_v5 = vld [vmem:[%s962_s11 + $0x30] sm:$0xff]   ;;  %701 = vmatpush3.bf16.msra.mxu1 %v779_v3  ;;  %v781_v6 = vld [vmem:[%s962_s11 + $0x28] sm:$0xff]   ;;  %v782_v7 = vld [vmem:[%s962_s11 + $0x20] sm:$0xff]   ;;  %s285_s30 = sand.u32 1, %s849_s16  }
  0x1a   : > { %694 = vmatprep.subr.bf16.mxu0 %v867_v0  ;;  %v321_v4 = vld [vmem:[%s294_s21] sm:$0xf]  ;;  %702 = vmatprep.subr.bf16.mxu1 %v867_v0  ;;  %v783_v8 = vld [vmem:[%s962_s11 + $0x18] sm:$0xff]   ;;  %v784_v9 = vld [vmem:[%s962_s11 + $0x10] sm:$0xff]   ;;  %s656_s5 = sshll.u32 %s285_s30, 3  ;;  %s793_s13 = sshll.u32 %s869_s18, 4  ;;  %s794_s13 = int_to_ptr.vmem [resolvable:$false] %s793_s13 }
  0x1b   : > { %v785_v10 = vld [vmem:[%s962_s11 + $0x8] sm:$0xff]   ;;  %v786_v11 = vld [vmem:[%s962_s11] sm:$0xff]   ;;  %s287_s29 = scalar_lea.vmem [#allocation2], %s656_s5  ;;  %s512_s11 = scalar_lea.sflag [#allocation3], %s285_s30 }
  0x1c   : > { %v662_v12 = vld [vmem:[%s309_s26] ss:$0 sm:$0xff]  ;;  %s526_s7 = sshll.u32 %s287_s29, 4  ;;  %s795_s14 = scalar_lea.vmem %s794_s13, 256  ;;  %s988_s7 = int_to_ptr.vmem [resolvable:$true] %s526_s7 }
  0x1d   : > { %695 = vmatpush3.bf16.msra.mxu0 %v778_v2  ;;  %703 = vmatpush3.bf16.msra.mxu1 %v780_v5  ;;  %s789_s12 = scalar_lea.vmem %s988_s7, 128  ;;  %p796_p1 = scmp.lt.s32.totalorder %s988_s7, %s794_s13 }
  0x1e   : > { %704 = vmatprep.subr.bf16.mxu1 %v867_v0  ;;  %p790_p12 = scmp.ne.s32.totalorder %s988_s7, %s789_s12  ;;  %p797_p2 = scmp.lt.s32.totalorder %s795_s14, %s789_s12 }
  0x20   : > { %697 = vmatmul.mubr.msk.bf16.vlgmr.msra.gmra.mxu0 %vm345_vm1, %v321_v4  ;;  %p791_p13 = pnand %p790_p12, %p935_p4  ;;  %p798_p3 = por %p797_p2, %p796_p1 }
  0x21   : > { %705 = vmatpush3.bf16.msra.mxu1 %v781_v6 }
  0x22   : > { %706 = vmatprep.subr.bf16.mxu1 %v867_v0  ;;  %p792_p0 = pneg %p791_p13 }
  0x24   : > { %p799_p5 = pnand %p798_p3, %p792_p0 }
  0x25   : > { %707 = vmatpush3.bf16.msra.mxu1 %v782_v7 }
  0x26   : > { %708 = vmatprep.subr.bf16.mxu1 %v867_v0 }
  0x29   : > { %709 = vmatpush3.bf16.msra.mxu1 %v783_v8 }
  0x2a   : > { %710 = vmatprep.subr.bf16.mxu1 %v867_v0 }
  0x2d   : > { %711 = vmatpush3.bf16.msra.mxu1 %v784_v9 }
  0x2e   : > { %712 = vmatprep.subr.bf16.mxu1 %v867_v0 }
  0x31   : > { %713 = vmatpush3.bf16.msra.mxu1 %v785_v10 }
  0x32   : > { %714 = vmatprep.subr.bf16.mxu1 %v867_v0 }
  0x35   : > { %715 = vmatpush3.bf16.msra.mxu1 %v786_v11 }
  0xe0   : > { %v383_v13 = vpop.f32.mrf.mxu0 }
  0xe1   : > { %v384_v14 = vadd.f32 %v662_v12, %v383_v13 }
  0xe2   : > { %v698_v15 = vpop.f32.mrf.mxu0 }
  0xe3   : > { %v390_v16 = vmul.f32 0.70710677, %v384_v14  ;;  %v389_v20 = vmul.f32 0.5, %v384_v14 }
  0xe4   : > { %v386_v17 = vpop.f32.mrf.mxu0 }
  0xe5   : > { %787 = verf.f32 %v390_v16 }
  0xe6   : > { %v699_v18 = vpop.f32.mrf.mxu0 }
  0xf2   : > { %v788_v19 = vpop.eup %787 }
  0xf3   : > { %v392_v21 = vadd.f32 1.0, %v788_v19 }
  0xf5   : > { %v393_v22 = vmul.f32 %v392_v21, %v389_v20 }
  0xf7   : > { %v394_v23 = vpack.c.bf16 %v393_v22, %v393_v22 }
  0xf9   : > { %717 = vmatmul.mubr.bf16.vlgmr.msra.gmra.mxu1 %v394_v23 }
 0x1b9   : > { %v493_v24 = vpop.f32.mrf.mxu1 }
 0x1ba   : > { %503 = vst.msk [vmem:[%s287_s29] sm:$0xff] %vm345_vm1, %v493_v24 }
 0x1bb   : > { %v718_v25 = vpop.f32.mrf.mxu1 }
 0x1bc   : > { %802 = shalt.err (!%p799_p5)
}
 0x1bd   : > { %s803_s21 = scalar_lea.hbm %s986_s10, 128  ;;  %s807_s26 = scalar_lea.hbm %s1037_s4, 512 }
 0x1be   : > { %p804_p6 = scmp.ne.s32.totalorder %s986_s10, %s803_s21  ;;  %p808_p10 = scmp.lt.s32.totalorder %s986_s10, %s1037_s4 }
 0x1bf   : > { %p809_p11 = scmp.lt.s32.totalorder %s807_s26, %s803_s21 }
 0x1c0   : > { %p805_p7 = pnand %p804_p6, %p935_p4 }
 0x1c1   : > { %p810_p12 = por %p809_p11, %p808_p10 }
 0x1c2   : > { %p806_p9 = pneg %p805_p7 }
 0x1c4   : > { %p811_p13 = pnand %p810_p12, %p806_p9 }
 0x1c6   : > { %814 = shalt.err (!%p811_p13)
}
 0x1c7   : > { %720 = dma.vmem_to_hbm [thread:$0]  (%p935_p4), %s988_s7, 128, %s986_s10, %s512_s11   ;;  %v496_v26 = vpop.f32.mrf.mxu1 }
 0x1c9   : > { %v719_v27 = vpop.f32.mrf.mxu1 }
 0x1ca PF: > { %p726_p0 = scmp.ge.s32.totalorder %s865_s20, 2  ;;  %s538_s6 = sand.u32 1, %s845_s15  }
 0x1cb   : > { %s539_s29 = scalar_lea.sflag [#allocation3], %s538_s6 }
 0x1cc   : > { %p723_p1 = pnand %p726_p0, %p942_p8 }
 0x1ce   : > { %p724_p2 = pneg %p723_p1 }
 0x1d0   : > { %840 = dma.done.wait (%p724_p2), %s539_s29, 128  }
 0x1d1   : > { %842 = vsyncadd (%p724_p2), %s539_s29, 4294967168  ;;  %s17_s20 = sadd.s32 1, %s865_s20   ;;  %s1040_s15 = smov %s849_s16 }
 0x1d2   : > { %p14_p3 = scmp.ge.s32.totalorder %s17_s20, 6   ;;  %s1041_s16 = smov %s853_s17 }
 0x1d3   : > { %s1042_s17 = smov %s948_s28  ;;  %s1043_s18 = smov %s861_s19 }
 0x1d4   : > { %s1044_s19 = smov %s1046_s23  ;;  %16 = sbr.rel (!%p14_p3) target bundleno = 4 (0x4), region = 88 }
 0x1d9   :  { %544 = vsyncpa [#allocation3], 1 }
 0x1da   :  { %546 = vsyncpa [#allocation3 + $0x1], 1 }

</bundles_post_ra>
